<compile_context>
chip_gen: v7x
topology: tpu7x:2x2x1
jax: 0.10.0
libtpu: 0.0.40
codegen_flags: <defaults>
</compile_context>

<pallas_src>
import functools

import jax
import jax.numpy as jnp
from jax import lax
from jax.experimental import pallas as pl
from jax.experimental.pallas import tpu as pltpu


def _fused_mbconv_kernel(x_ref, w1_ref, b1_ref, *rest,
                         K, H, Wp, pad, Cout, has_expansion, has_shortcut):
    """One batch element per grid step.

    x_ref  : (1, Cin_pad, Hp*Wp + 2*pad)  zero-extended, fully padded, flattened input
    w1_ref : (C1, K*K*Cin_pad)            first conv weights, BN scale folded in
    b1_ref : (C1, 1)                      folded BN bias of first conv
    w2_ref : (Cout, C1)                   1x1 project conv weights, BN scale folded in
    b2_ref : (Cout, 1)                    folded BN bias of project conv
    out_ref: (1, Cout, H*Wp)              lane-dense output slab (width halo kept)
    """
    if has_expansion:
        w2_ref, b2_ref, out_ref = rest
    else:
        out_ref, = rest

    HWp = H * Wp
    x = x_ref[0]                                   # (Cin_pad, Hp*Wp + 2*pad)

    # im2col: K*K statically shifted lane-slices of the flattened padded image,
    # stacked along the (tile-aligned) sublane axis -> a single MXU matmul.
    taps = []
    for di in range(K):
        for dj in range(K):
            off = di * Wp + dj
            taps.append(x[:, off:off + HWp])       # (Cin_pad, H*Wp)
    lhs = jnp.concatenate(taps, axis=0)            # (K*K*Cin_pad, H*Wp)

    # conv1 (+ folded BN scale) as one matmul; add the BN bias.
    h = jnp.dot(w1_ref[...], lhs, preferred_element_type=jnp.float32)
    h = h + b1_ref[...]                            # (C1, H*Wp) + (C1, 1)

    if has_expansion:
        h = h * jax.nn.sigmoid(h)                  # SiLU (f32, EUP)
        y = jnp.dot(w2_ref[...], h.astype(w2_ref.dtype),
                    preferred_element_type=jnp.float32)
        y = y + b2_ref[...]                        # project conv + BN (Identity act)
    else:
        y = h * jax.nn.sigmoid(h)                  # single ConvBNAct with SiLU

    if has_shortcut:
        # Center tap of the first Cout (== Cin) channels is exactly the original x.
        center = pad * Wp + pad
        y = y + x[:Cout, center:center + HWp].astype(jnp.float32)

    out_ref[...] = y[None].astype(out_ref.dtype)   # (1, Cout, H*Wp), lane-dense store


def _prep_input(x_nchw, cin_pad, pad, cdtype):
    """NCHW -> zero-padded, channel-padded, flattened (N, Cin_pad, Hp*Wp + 2*pad).

    Only reshapes and a small constant pad (no transposes, no full-image extra
    HBM passes)."""
    N, Cin, H, W = x_nchw.shape
    Hp, Wp = H + 2 * pad, W + 2 * pad
    x = x_nchw.astype(cdtype)
    x = jnp.pad(x, ((0, 0), (0, cin_pad - Cin), (pad, pad), (pad, pad)))
    x = x.reshape(N, cin_pad, Hp * Wp)
    x = jnp.pad(x, ((0, 0), (0, 0), (pad, pad)))   # flat halo for the corner taps
    return x


def fused_mbconv_forward(x_nchw, params, *, kernel_size, stride, has_expansion,
                         has_shortcut, compute_dtype=None):
    assert stride == 1, "only stride=1 supported"   # TODO(synk): stride=2
    K = kernel_size
    pad = (K - 1) // 2
    N, Cin, H, W = x_nchw.shape
    Wp = W + 2 * pad
    HWp = H * Wp
    cdtype = jnp.dtype(compute_dtype) if compute_dtype is not None else x_nchw.dtype

    w1 = params["w1"].astype(cdtype)                # (C1, K*K*Cin_pad), scale folded
    b1 = params["b1"].astype(jnp.float32)           # (C1, 1)
    C1, KKCp = w1.shape
    cin_pad = KKCp // (K * K)
    if has_expansion:
        w2 = params["w2"].astype(cdtype)            # (Cout, C1), scale folded
        b2 = params["b2"].astype(jnp.float32)       # (Cout, 1)
        Cout = w2.shape[0]
    else:
        Cout = C1
    if has_shortcut:
        assert Cin == Cout, "shortcut requires input_c == out_c"

    xk = _prep_input(x_nchw, cin_pad, pad, cdtype)
    Lx = xk.shape[-1]                               # Hp*Wp + 2*pad

    kernel = functools.partial(
        _fused_mbconv_kernel, K=K, H=H, Wp=Wp, pad=pad, Cout=Cout,
        has_expansion=has_expansion, has_shortcut=has_shortcut)

    in_specs = [
        pl.BlockSpec((1, cin_pad, Lx), lambda b: (b, 0, 0)),
        pl.BlockSpec((C1, KKCp), lambda b: (0, 0)),
        pl.BlockSpec((C1, 1), lambda b: (0, 0)),
    ]
    args = [xk, w1, b1]
    if has_expansion:
        in_specs += [pl.BlockSpec((Cout, C1), lambda b: (0, 0)),
                     pl.BlockSpec((Cout, 1), lambda b: (0, 0))]
        args += [w2, b2]

    out_flat = pl.pallas_call(
        kernel,
        out_shape=jax.ShapeDtypeStruct((N, Cout, HWp), x_nchw.dtype),
        grid_spec=pltpu.PrefetchScalarGridSpec(
            num_scalar_prefetch=0,
            grid=(N,),
            in_specs=in_specs,
            out_specs=pl.BlockSpec((1, Cout, HWp), lambda b: (b, 0, 0)),
        ),
        compiler_params=pltpu.CompilerParams(
            dimension_semantics=("parallel",)),
    )(*args)

    # Strip the width halo: NCHW output with one cheap slice, no transposes.
    out = out_flat.reshape(N, Cout, H, Wp)[:, :, :, pad:pad + W]
    return out


def _fold_bn(gamma, beta, mean, var, eps=1e-5):
    scale = gamma / jnp.sqrt(var + eps)
    bias = beta - mean * scale
    return scale, bias


def make_params(key, *, kernel_size, input_c, out_c, expand_ratio):
    """Deterministic synthetic parameters mirroring FusedMBConv.__init__.

    Kernel-side weights are pre-laid-out host-side:
      w1: (C1, K*K*Cin_pad), contraction ordered (tap-major, cin-minor), zero rows
          for padded channels, BN scale folded in.
      w2: (Cout, C1), BN scale folded in.   b1/b2: (C, 1) folded BN biases.
    """
    K = kernel_size
    expanded_c = input_c * expand_ratio
    has_expansion = expand_ratio != 1
    c1_out = expanded_c if has_expansion else out_c
    cin_pad = ((input_c + 7) // 8) * 8
    ks = jax.random.split(key, 10)

    # conv1: torch layout (O, I, K, K)
    w1_oihw = jax.random.normal(ks[0], (c1_out, input_c, K, K), jnp.float32) * 0.1
    g1 = jax.random.normal(ks[1], (c1_out,), jnp.float32) * 0.1 + 1.0
    be1 = jax.random.normal(ks[2], (c1_out,), jnp.float32) * 0.1
    m1 = jax.random.normal(ks[3], (c1_out,), jnp.float32) * 0.1
    v1 = jax.random.uniform(ks[4], (c1_out,), jnp.float32, 0.5, 1.5)
    s1, b1 = _fold_bn(g1, be1, m1, v1)

    w1_k = jnp.zeros((c1_out, K, K, cin_pad), jnp.float32)
    w1_k = w1_k.at[:, :, :, :input_c].set(jnp.transpose(w1_oihw, (0, 2, 3, 1)))
    w1_k = w1_k.reshape(c1_out, K * K * cin_pad) * s1[:, None]

    params = {"w1": w1_k, "b1": b1[:, None]}
    torch_style = {"w1_oihw": w1_oihw, "s1": s1, "b1": b1}

    if has_expansion:
        # project 1x1 conv: torch layout (O, I, 1, 1) -> (O, I)
        w2_oi = jax.random.normal(ks[5], (out_c, expanded_c), jnp.float32) * 0.1
        g2 = jax.random.normal(ks[6], (out_c,), jnp.float32) * 0.1 + 1.0
        be2 = jax.random.normal(ks[7], (out_c,), jnp.float32) * 0.1
        m2 = jax.random.normal(ks[8], (out_c,), jnp.float32) * 0.1
        v2 = jax.random.uniform(ks[9], (out_c,), jnp.float32, 0.5, 1.5)
        s2, b2 = _fold_bn(g2, be2, m2, v2)
        params["w2"] = w2_oi * s2[:, None]
        params["b2"] = b2[:, None]
        torch_style.update({"w2_oi": w2_oi, "s2": s2, "b2": b2})

    return params, torch_style, has_expansion


def reference_forward(x_nchw, tp, *, kernel_size, has_expansion, has_shortcut):
    """Pure-JAX NCHW reference matching the PyTorch module (eval mode)."""
    pad = (kernel_size - 1) // 2
    y = lax.conv_general_dilated(
        x_nchw, tp["w1_oihw"], window_strides=(1, 1),
        padding=[(pad, pad), (pad, pad)],
        dimension_numbers=("NCHW", "OIHW", "NCHW"))
    y = y * tp["s1"][None, :, None, None] + tp["b1"][None, :, None, None]
    if has_expansion:
        y = y * jax.nn.sigmoid(y)
        y = lax.conv_general_dilated(
            y, tp["w2_oi"][:, :, None, None], window_strides=(1, 1),
            padding=[(0, 0), (0, 0)],
            dimension_numbers=("NCHW", "OIHW", "NCHW"))
        y = y * tp["s2"][None, :, None, None] + tp["b2"][None, :, None, None]
    else:
        y = y * jax.nn.sigmoid(y)
    if has_shortcut:
        y = y + x_nchw
    return y


if __name__ == "__main__":
    key = jax.random.PRNGKey(0)
    kx, kp1, kp2 = jax.random.split(key, 3)

    # FusedMBConv(kernel_size=3, input_c=4, out_c=4, expand_ratio=4,
    #             stride=1, se_ratio=0, drop_rate=0.2) -- eval mode.
    kernel_size, input_c, out_c, expand_ratio, stride = 3, 4, 4, 4, 1
    has_shortcut = (stride == 1 and input_c == out_c)
    x = jax.random.normal(kx, (2, input_c, 16, 16), jnp.float32)   # NCHW

    params, tp, has_expansion = make_params(
        kp1, kernel_size=kernel_size, input_c=input_c, out_c=out_c,
        expand_ratio=expand_ratio)

    # f32 expansion path
    out = jax.block_until_ready(fused_mbconv_forward(
        x, params, kernel_size=kernel_size, stride=stride,
        has_expansion=has_expansion, has_shortcut=has_shortcut))
    ref = jax.block_until_ready(reference_forward(
        x, tp, kernel_size=kernel_size, has_expansion=has_expansion,
        has_shortcut=has_shortcut))
    assert out.shape == (2, out_c, 16, 16), out.shape
    err = float(jnp.max(jnp.abs(out - ref)))
    assert err < 1e-4, f"f32 expansion path: max abs error {err}"

    # bf16-compute expansion path (f32 accumulation / BN / SiLU / output)
    out_bf16 = jax.block_until_ready(fused_mbconv_forward(
        x, params, kernel_size=kernel_size, stride=stride,
        has_expansion=has_expansion, has_shortcut=has_shortcut,
        compute_dtype=jnp.bfloat16))
    err_bf16 = float(jnp.max(jnp.abs(out_bf16 - ref)))
    assert err_bf16 < 1e-1, f"bf16 expansion path: max abs error {err_bf16}"

    # expand_ratio=1 path (single KxK ConvBNAct with SiLU, no project conv args)
    params_b, tp_b, has_expansion_b = make_params(
        kp2, kernel_size=kernel_size, input_c=input_c, out_c=out_c,
        expand_ratio=1)
    out_b = jax.block_until_ready(fused_mbconv_forward(
        x, params_b, kernel_size=kernel_size, stride=stride,
        has_expansion=has_expansion_b, has_shortcut=has_shortcut))
    ref_b = jax.block_until_ready(reference_forward(
        x, tp_b, kernel_size=kernel_size, has_expansion=has_expansion_b,
        has_shortcut=has_shortcut))
    err_b = float(jnp.max(jnp.abs(out_b - ref_b)))
    assert err_b < 1e-4, f"f32 no-expansion path: max abs error {err_b}"

    print("KERNEL_OK")
</pallas_src>

<mosaic_0001>
module attributes {stable_mosaic.version = 11 : i64} {
  func.func @_fused_mbconv_kernel(%arg0: i32, %arg1: memref<1x8x326xf32, #tpu.memory_space<vmem>>, %arg2: memref<16x72xf32, #tpu.memory_space<vmem>>, %arg3: memref<16x1xf32, #tpu.memory_space<vmem>>, %arg4: memref<4x16xf32, #tpu.memory_space<vmem>>, %arg5: memref<4x1xf32, #tpu.memory_space<vmem>>, %arg6: memref<1x4x288xf32, #tpu.memory_space<vmem>>) attributes {dimension_semantics = [#tpu.dimension_semantics<parallel>], iteration_bounds = array<i64: 2>, scalar_prefetch = 0 : i64, scratch_operands = 0 : i64, tpu.core_type = #tpu.core_type<tc>, window_params = [{transform_indices = @transform_0, window_bounds = array<i64: 1, 8, 326>}, {pipeline_mode = #tpu.pipeline_mode<synchronous>, transform_indices = @transform_1, window_bounds = array<i64: 16, 72>}, {pipeline_mode = #tpu.pipeline_mode<synchronous>, transform_indices = @transform_2, window_bounds = array<i64: 16, 1>}, {pipeline_mode = #tpu.pipeline_mode<synchronous>, transform_indices = @transform_3, window_bounds = array<i64: 4, 16>}, {pipeline_mode = #tpu.pipeline_mode<synchronous>, transform_indices = @transform_4, window_bounds = array<i64: 4, 1>}, {transform_indices = @transform_5, window_bounds = array<i64: 1, 4, 288>}]} {
    %c0 = arith.constant 0 : index
    %c0_0 = arith.constant 0 : index
    %c0_1 = arith.constant 0 : index
    %0 = vector.load %arg1[%c0, %c0_0, %c0_1] : memref<1x8x326xf32, #tpu.memory_space<vmem>>, vector<1x8x326xf32>
    %1 = vector.shape_cast %0 : vector<1x8x326xf32> to vector<8x326xf32>
    %2 = vector.extract_strided_slice %1 {offsets = [0, 0], sizes = [8, 288], strides = [1, 1]} : vector<8x326xf32> to vector<8x288xf32>
    %3 = vector.extract_strided_slice %1 {offsets = [0, 1], sizes = [8, 288], strides = [1, 1]} : vector<8x326xf32> to vector<8x288xf32>
    %4 = vector.extract_strided_slice %1 {offsets = [0, 2], sizes = [8, 288], strides = [1, 1]} : vector<8x326xf32> to vector<8x288xf32>
    %5 = vector.extract_strided_slice %1 {offsets = [0, 18], sizes = [8, 288], strides = [1, 1]} : vector<8x326xf32> to vector<8x288xf32>
    %6 = vector.extract_strided_slice %1 {offsets = [0, 19], sizes = [8, 288], strides = [1, 1]} : vector<8x326xf32> to vector<8x288xf32>
    %7 = vector.extract_strided_slice %1 {offsets = [0, 20], sizes = [8, 288], strides = [1, 1]} : vector<8x326xf32> to vector<8x288xf32>
    %8 = vector.extract_strided_slice %1 {offsets = [0, 36], sizes = [8, 288], strides = [1, 1]} : vector<8x326xf32> to vector<8x288xf32>
    %9 = vector.extract_strided_slice %1 {offsets = [0, 37], sizes = [8, 288], strides = [1, 1]} : vector<8x326xf32> to vector<8x288xf32>
    %10 = vector.extract_strided_slice %1 {offsets = [0, 38], sizes = [8, 288], strides = [1, 1]} : vector<8x326xf32> to vector<8x288xf32>
    %11 = tpu.concatenate %2, %3, %4, %5, %6, %7, %8, %9, %10 in 0 : vector<8x288xf32>, vector<8x288xf32>, vector<8x288xf32>, vector<8x288xf32>, vector<8x288xf32>, vector<8x288xf32>, vector<8x288xf32>, vector<8x288xf32>, vector<8x288xf32> -> vector<72x288xf32>
    %c0_2 = arith.constant 0 : index
    %c0_3 = arith.constant 0 : index
    %12 = vector.load %arg2[%c0_2, %c0_3] : memref<16x72xf32, #tpu.memory_space<vmem>>, vector<16x72xf32>
    %cst = arith.constant dense<0.000000e+00> : vector<16x288xf32>
    %13 = tpu.matmul %12, %11, %cst {dimension_numbers = #tpu.dot_dimension_numbers<[1], [0], [0], [1], [0, 0, 1, 1], [], []>} : vector<16x72xf32>, vector<72x288xf32>, vector<16x288xf32> -> vector<16x288xf32>
    %c0_4 = arith.constant 0 : index
    %c0_5 = arith.constant 0 : index
    %14 = vector.load %arg3[%c0_4, %c0_5] : memref<16x1xf32, #tpu.memory_space<vmem>>, vector<16x1xf32>
    %15 = vector.broadcast %14 : vector<16x1xf32> to vector<16x288xf32>
    %16 = arith.addf %13, %15 : vector<16x288xf32>
    %17 = arith.negf %16 : vector<16x288xf32>
    %18 = math.exp %17 : vector<16x288xf32>
    %cst_6 = arith.constant 1.000000e+00 : f32
    %19 = vector.broadcast %cst_6 : f32 to vector<16x288xf32>
    %20 = arith.addf %19, %18 : vector<16x288xf32>
    %21 = arith.divf %19, %20 : vector<16x288xf32>
    %22 = arith.mulf %16, %21 : vector<16x288xf32>
    %c0_7 = arith.constant 0 : index
    %c0_8 = arith.constant 0 : index
    %23 = vector.load %arg4[%c0_7, %c0_8] : memref<4x16xf32, #tpu.memory_space<vmem>>, vector<4x16xf32>
    %cst_9 = arith.constant dense<0.000000e+00> : vector<4x288xf32>
    %24 = tpu.matmul %23, %22, %cst_9 {dimension_numbers = #tpu.dot_dimension_numbers<[1], [0], [0], [1], [0, 0, 1, 1], [], []>} : vector<4x16xf32>, vector<16x288xf32>, vector<4x288xf32> -> vector<4x288xf32>
    %c0_10 = arith.constant 0 : index
    %c0_11 = arith.constant 0 : index
    %25 = vector.load %arg5[%c0_10, %c0_11] : memref<4x1xf32, #tpu.memory_space<vmem>>, vector<4x1xf32>
    %26 = vector.broadcast %25 : vector<4x1xf32> to vector<4x288xf32>
    %27 = arith.addf %24, %26 : vector<4x288xf32>
    %28 = vector.extract_strided_slice %1 {offsets = [0, 19], sizes = [4, 288], strides = [1, 1]} : vector<8x326xf32> to vector<4x288xf32>
    %29 = arith.addf %27, %28 : vector<4x288xf32>
    %30 = vector.shape_cast %29 : vector<4x288xf32> to vector<1x4x288xf32>
    %c0_12 = arith.constant 0 : index
    %c0_13 = arith.constant 0 : index
    %c0_14 = arith.constant 0 : index
    %31 = vector.load %arg6[%c0_12, %c0_13, %c0_14] : memref<1x4x288xf32, #tpu.memory_space<vmem>>, vector<1x4x288xf32>
    tpu.vector_store %arg6[%c0_12, %c0_13, %c0_14], %30 {strides = array<i32>} : memref<1x4x288xf32, #tpu.memory_space<vmem>>, vector<1x4x288xf32>,
    return
  }
  func.func @transform_0(%arg0: i32) -> (i32, i32, i32) {
    %c0_i32 = arith.constant 0 : i32
    %c0_i32_0 = arith.constant 0 : i32
    %c0_i32_1 = arith.constant 0 : i32
    return %arg0, %c0_i32, %c0_i32_0 : i32, i32, i32
  }
  func.func @transform_1(%arg0: i32) -> (i32, i32) {
    %c0_i32 = arith.constant 0 : i32
    %c0_i32_0 = arith.constant 0 : i32
    %c0_i32_1 = arith.constant 0 : i32
    return %c0_i32, %c0_i32_0 : i32, i32
  }
  func.func @transform_2(%arg0: i32) -> (i32, i32) {
    %c0_i32 = arith.constant 0 : i32
    %c0_i32_0 = arith.constant 0 : i32
    %c0_i32_1 = arith.constant 0 : i32
    return %c0_i32, %c0_i32_0 : i32, i32
  }
  func.func @transform_3(%arg0: i32) -> (i32, i32) {
    %c0_i32 = arith.constant 0 : i32
    %c0_i32_0 = arith.constant 0 : i32
    %c0_i32_1 = arith.constant 0 : i32
    return %c0_i32, %c0_i32_0 : i32, i32
  }
  func.func @transform_4(%arg0: i32) -> (i32, i32) {
    %c0_i32 = arith.constant 0 : i32
    %c0_i32_0 = arith.constant 0 : i32
    %c0_i32_1 = arith.constant 0 : i32
    return %c0_i32, %c0_i32_0 : i32, i32
  }
  func.func @transform_5(%arg0: i32) -> (i32, i32, i32) {
    %c0_i32 = arith.constant 0 : i32
    %c0_i32_0 = arith.constant 0 : i32
    %c0_i32_1 = arith.constant 0 : i32
    return %arg0, %c0_i32, %c0_i32_0 : i32, i32, i32
  }
}

</mosaic_0001>

<bundles_post_ra>
// kernel: tpu_custom_call.1
= control target key start
LH: loop header
LB: loop body
LE: loop exit
PB: predicated region body
PF: predicated region fallthrough
CT: control target
= control target key end

     0   :  { %10 = vsyncpa [#allocation3], 0  ;;  %s1370_s0 = inlined_call_operand.hbm [shape: f32[2,8,326], index: 0, kind: input, shape index: {}]   ;;  %s1371_s1 = inlined_call_operand.vmem [shape: f32[16,72], index: 1, kind: input, shape index: {}]   ;;  %s1372_s2 = inlined_call_operand.vmem [shape: f32[16,1], index: 2, kind: input, shape index: {}]   ;;  %s1373_s3 = inlined_call_operand.vmem [shape: f32[4,16], index: 3, kind: input, shape index: {}]   ;;  %s1374_s4 = inlined_call_operand.vmem [shape: f32[4,1], index: 4, kind: input, shape index: {}]   ;;  %s1375_s5 = inlined_call_operand.hbm [shape: f32[2,4,288], index: 5, kind: output, shape index: {}]  }
   0x1   :  { %12 = vsyncpa [#allocation3 + $0x1], 0 }
   0x2   :  { %13 = vsyncpa [#allocation4], 0 }
   0x3   :  { %15 = vsyncpa [#allocation4 + $0x1], 0  ;;  %s1167_s18 = smov 0   ;;  %s1169_s19 = smov 0  }
   0x4   :  { %s1171_s20 = smov 0   ;;  %s1173_s21 = smov 0  }
   0x5 LB: > { %s1188_s22 = sadd.s32 4294967295, %s1121_s21   ;;  %s805_s23 = sadd.s32 4294967294, %s1121_s21   ;;  %s1121_s21 = sphi %s1173_s21, %s1389_s21   ;;  %s1117_s20 = sphi %s1171_s20, %s1388_s20   ;;  %s1113_s19 = sphi %s1169_s19, %s1387_s19   ;;  %s1109_s18 = sphi %s1167_s18, %s1386_s18  }
   0x6   : > { %s1192_s24 = sadd.s32 1, %s1121_s21   ;;  %s28_s25 = sadd.s32 1, %s1117_s20 }
   0x7   : > { %s25_s26 = ssub.s32 %s1121_s21, %s1192_s24  ;;  %p35_p0 = scmp.ne.s32.totalorder %s1117_s20, %s1113_s19 }
   0x8   : > { %p26_p1 = scmp.eq.s32.totalorder %s25_s26, 0  ;;  %p36_p2 = scmp.eq.s32.totalorder %s1121_s21, 0 }
   0x9   : > { %p41_p3 = scmp.ne.s32.totalorder %s1113_s19, %s1109_s18  ;;  %p42_p4 = scmp.eq.s32.totalorder %s1188_s22, 0 }
   0xa   : > { %s1204_s27 = scalar_select %p26_p1, %s1117_s20, %s28_s25  }
   0xb   : > { %p37_p5 = por %p36_p2, %p35_p0  ;;  %p1206_p6 = por %p42_p4, %p41_p3 }
   0xc   : > { %p149_p7 = scmp.eq.s32.totalorder %s1188_s22, 1  ;;  %p155_p8 = scmp.eq.s32.totalorder %s805_s23, 1 }
   0xd   : > { %p923_p10 = scmp.lt.s32.totalorder %s1121_s21, 2  ;;  %s187_s6 = sand.u32 1, %s1117_s20  }
   0xe   : > { %p1213_p11 = por %p149_p7, %p35_p0  ;;  %p1217_p12 = por %p155_p8, %p41_p3 }
   0xf   : > { %s907_s7 = smul.u32 384, %s1121_s21  ;;  %p1228_p13 = pnand %p923_p10, %p37_p5 }
  0x10   : > { %s1378_s29 = scalar_select %p1213_p11, 1, 0 }
  0x11   : > { %s1379_s30 = scalar_select %p1217_p12, 1, 0 }
  0x12   : > { %s906_s8 = smul.u32 24, %s187_s6  ;;  %s1226_s11 = scalar_lea.hbm %s1370_s0, %s907_s7 }
  0x13   : > { %s188_s15 = scalar_lea.sflag [#allocation3], %s187_s6  ;;  %s1025_s16 = scalar_lea.hbm %s1226_s11, 384 }
  0x14   : > { %s191_s13 = scalar_lea.vmem [#allocation2], %s906_s8  ;;  %p1026_p2 = scmp.ne.s32.totalorder %s1226_s11, %s1025_s16 }
  0x15   : > { %s199_s14 = sshll.u32 %s191_s13, 4  ;;  %p1027_p3 = pneg %p1228_p13  ;;  %s1233_s14 = int_to_ptr.vmem [resolvable:$true] %s199_s14 }
  0x16   : > { %s1030_s25 = scalar_lea.hbm %s1370_s0, 768  ;;  %p1031_p7 = scmp.lt.u32.totalorder %s1226_s11, %s1370_s0 }
  0x17   : > { %p1028_p4 = pnand %p1027_p3, %p1026_p2  ;;  %p1032_p8 = scmp.lt.u32.totalorder %s1030_s25, %s1025_s16 }
  0x18   : > { %p1034_p9 = scmp.lt.u32.totalorder %s1025_s16, %s1226_s11 }
  0x19   : > { %p1029_p5 = pneg %p1028_p4  ;;  %p1033_p10 = por %p1032_p8, %p1031_p7 }
  0x1b   : > { %p1035_p0 = por %p1034_p9, %p1033_p10 }
  0x1d   : > { %p1036_p1 = pnand %p1035_p0, %p1029_p5 }
  0x1f   : > { %1039 = shalt.err (!%p1036_p1)
}
  0x20   : > { %s1040_s6 = scalar_lea.vmem %s1233_s14, 384  ;;  %s1123_s8 = smov [#allocation2]  }
  0x21   : > { %p1041_p2 = scmp.ne.s32.totalorder %s1233_s14, %s1040_s6  ;;  %s1045_s9 = sshll.u32 %s1123_s8, 4  ;;  %s1046_s9 = int_to_ptr.vmem [resolvable:$false] %s1045_s9 }
  0x22   : > { %s1047_s10 = scalar_lea.vmem %s1046_s9, 768  ;;  %p1048_p11 = scmp.lt.s32.totalorder %s1233_s14, %s1046_s9 }
  0x23   : > { %p1043_p4 = pnand %p1041_p2, %p1027_p3  ;;  %p1049_p7 = scmp.lt.s32.totalorder %s1047_s10, %s1040_s6 }
  0x25   : > { %p1044_p12 = pneg %p1043_p4  ;;  %p1050_p8 = por %p1049_p7, %p1048_p11 }
  0x27   : > { %p1051_p9 = pnand %p1050_p8, %p1044_p12 }
  0x29   : > { %1054 = shalt.err (!%p1051_p9)
}
  0x2a   : > { %918 = dma.hbm_to_vmem [thread:$0]  (!%p1228_p13), %s1226_s11, 384, %s1233_s14, %s188_s15  }
  0x2b   : > { %p1381_p0 = scmp.lt.s32.totalorder %s1121_s21, 3  ;;  %p1382_p1 = scmp.ge.s32.totalorder %s1121_s21, 1 }
  0x2d   : > { %p205_p3 = pnand %p1382_p1, %p1381_p0 }
  0x2e   : > { %s1266_s13 = sand.u32 (!%p205_p3), 1, %s1113_s19  }
  0x2f   : > { %208 = sbr.rel (%p205_p3) target bundleno = 695 (0x2b7), region = 40  ;;  %s211_s17 = scalar_lea.sflag (!%p205_p3), [#allocation3], %s1266_s13 }
  0x30   : > { %s908_s16 = smul.u32 (!%p205_p3), 24, %s1266_s13 }
  0x32   : > { %s214_s23 = scalar_lea.vmem (!%p205_p3), [#allocation2], %s908_s16 }
  0x36   : > { %1100 = dma.done.wait (%p1206_p6), %s211_s17, 384  }
  0x37   : > { %1102 = vsyncadd (%p1206_p6), %s211_s17, 4294966912  ;;  %v242_v0 = vld [vmem:[%s214_s23 + $0x8] sm:$0xff]  ;;  %v243_v1 = vld [vmem:[%s214_s23 + $0x10] sm:$0xff]  ;;  %s1124_s11 = smov 126   ;;  %s1125_s12 = smov 127   ;;  %vm357_vm0 = vcmask 588800  }
  0x38   : > { %v974_v2 = vpack.i.bf16 %v243_v1, %v242_v0  ;;  %v241_v3 = vld [vmem:[%s214_s23] sm:$0xff]  ;;  %s1126_s14 = smov 110   ;;  %s1127_s15 = smov 109   ;;  %v1130_v5 = vmov 0.0   ;;  %v1133_v6 = vmov 0   ;;  %v346_v7 = vld [vmem:[%s1372_s2 + $0x8] sm:$0xff] }
  0x39   : > { %s1128_s25 = smov 108   ;;  %v1277_v4 = vld [vmem:[%s1371_s1] sm:$0xff]  ;;  %s1129_s7 = smov 92   ;;  %428 = vmatprep.mubr.f32.mxu0 %v1130_v5  ;;  %1000 = vset.pattern.permute.xlu1 %v1133_v6  ;;  %vm253_vm1 = vcmask 1039360   ;;  %vm277_vm2 = vcmask 900096   ;;  %vm265_vm3 = vcmask 1031168  }
  0x3a   : > { %975 = vrot.lane.b32.xlu1 %v974_v2, %s1124_s11  ;;  %970 = vrot.lane.b32.xlu0 %v974_v2, %s1125_s12  ;;  %s1131_s6 = smov 91   ;;  %s1132_s8 = smov 90   ;;  %v345_v8 = vld [vmem:[%s1372_s2] sm:$0xff]  ;;  %vm289_vm4 = vcmask 891904   ;;  %vm301_vm5 = vcmask 883712   ;;  %vm313_vm6 = vcmask 752640  }
  0x3b   : > { %857 = vmatprep.mubr.msk.f32.mxu1 %vm357_vm0, %v1277_v4  ;;  %999 = vset.pattern.permute.xlu0 %v1133_v6  ;;  %v559_v9 = vld [vmem:[%s1374_s4] sm:$0xf]  ;;  %vm325_vm7 = vcmask 744448   ;;  %vm337_vm8 = vcmask 736256   ;;  %vm1135_vm9 = vmmov 0   ;;  %vm565_vm10 = vcmask 130048  }
  0x3c   : > { %s909_s28 = smul.u32 12, %s1266_s13  ;;  %vm718_vm11 = vcmask 257024   ;;  %s721_s16 = scalar_lea.sflag [#allocation4], %s1266_s13 }
  0x3d   : > { %p1383_p11 = scmp.ne.s32.totalorder %s1378_s29, 0 }
  0x3e   : > { %980 = vrot.lane.b32.xlu1 %v974_v2, %s1126_s14  ;;  %247 = vrot.lane.b32.xlu0 %v241_v3, %s1125_s12  ;;  %s240_s26 = scalar_lea.vmem [#allocation5], %s909_s28 }
  0x42   : > { %271 = vrot.lane.b32.xlu1 %v241_v3, %s1126_s14  ;;  %259 = vrot.lane.b32.xlu0 %v241_v3, %s1124_s11 }
  0x46   : > { %287 = vrot.lane.b32.xlu1 %v243_v1, %s1127_s15  ;;  %285 = vrot.lane.b32.xlu0 %v242_v0, %s1127_s15 }
  0x4a   : > { %283 = vrot.lane.b32.xlu1 %v241_v3, %s1127_s15  ;;  %985 = vrot.lane.b32.xlu0 %v974_v2, %s1128_s25 }
  0x4e   : > { %990 = vrot.lane.b32.xlu1 %v974_v2, %s1129_s7  ;;  %295 = vrot.lane.b32.xlu0 %v241_v3, %s1128_s25 }
  0x52   : > { %307 = vrot.lane.b32.xlu1 %v241_v3, %s1129_s7  ;;  %995 = vrot.lane.b32.xlu0 %v974_v2, %s1131_s6  ;;  %v344_v2 = vld [vmem:[%s1371_s1 + $0x8] sm:$0xff]  ;;  %s910_s7 = smul.u32 192, %s1188_s22  ;;  %s1136_s22 = smov [#allocation5]  }
  0x53   : > { %s1059_s23 = sshll.u32 %s1136_s22, 4  ;;  %s1060_s23 = int_to_ptr.vmem [resolvable:$false] %s1059_s23 }
  0x54   : > { %s1326_s10 = scalar_lea.hbm %s1375_s5, %s910_s7  ;;  %s1061_s11 = scalar_lea.vmem %s1060_s23, 384 }
  0x56   : > { %333 = vrot.lane.b32.xlu1 %v242_v0, %s1132_s8  ;;  %319 = vrot.lane.b32.xlu0 %v241_v3, %s1131_s6  ;;  %s735_s6 = sshll.u32 %s240_s26, 4  ;;  %s1328_s6 = int_to_ptr.vmem [resolvable:$true] %s735_s6 }
  0x57   : > { %s1055_s17 = scalar_lea.vmem %s1328_s6, 192  ;;  %p1062_p5 = scmp.lt.s32.totalorder %s1328_s6, %s1060_s23 }
  0x58   : > { %p1056_p6 = scmp.ne.s32.totalorder %s1328_s6, %s1055_s17  ;;  %p1063_p10 = scmp.lt.s32.totalorder %s1061_s11, %s1055_s17 }
  0x5a   : > { %331 = vrot.lane.b32.xlu1 %v241_v3, %s1132_s8  ;;  %335 = vrot.lane.b32.xlu0 %v243_v1, %s1132_s8  ;;  %p1057_p12 = pnand %p1056_p6, %p1383_p11  ;;  %p1064_p2 = por %p1063_p10, %p1062_p5 }
  0x5c   : > { %p1058_p13 = pneg %p1057_p12 }
  0x5e   : > { %354 = vperm.xlu1 %1000, %v346_v7   ;;  %349 = vperm.xlu0 %999, %v345_v8   ;;  %v1134_v7 = vmov 0.0|0.0   ;;  %p1065_p4 = pnand %p1064_p2, %p1058_p13 }
  0x62   : > { %562 = vperm.xlu1 %1000, %v559_v9  }
  0xac   : > { %v976_v10 = vpop.permute.xlu1 %975  ;;  %v971_v11 = vpop.permute.xlu0 %970 }
  0xad   : > { %v973_v12 = vunpack.i.h.bf16 %v971_v11  ;;  %v972_v13 = vunpack.i.l.bf16 %v971_v11  ;;  %v978_v14 = vunpack.i.h.bf16 %v976_v10  ;;  %v977_v15 = vunpack.i.l.bf16 %v976_v10 }
  0xaf   : > { %v883_v16 = vpack.c.bf16 %v973_v12, %v243_v1  ;;  %v255_v17 = vsel %vm253_vm1, %v972_v13, %v973_v12  ;;  %v267_v26 = vsel %vm265_vm3, %v977_v15, %v978_v14 }
  0xb0   : > { %v981_v18 = vpop.permute.xlu1 %980  ;;  %v248_v19 = vpop.permute.xlu0 %247  ;;  %v867_v20 = vpack.c.bf16 %v255_v17, %v242_v0 }
  0xb1   : > { %v983_v21 = vunpack.i.h.bf16 %v981_v18  ;;  %v982_v22 = vunpack.i.l.bf16 %v981_v18  ;;  %v254_v23 = vsel %vm253_vm1, %v248_v19, %v972_v13  ;;  %884 = vmatprep.subr.bf16.mxu1 %v883_v16 }
  0xb2   : > { %868 = vmatprep.subr.bf16.mxu0 %v867_v20  ;;  %886 = vmatpush3.bf16.msra.mxu1 %v883_v16  ;;  %v869_v24 = vpack.c.bf16 %v254_v23, %v241_v3 }
  0xb3   : > { %v887_v25 = vpack.c.bf16 %v983_v21, %v978_v14  ;;  %v279_v27 = vsel %vm277_vm2, %v982_v22, %v983_v21 }
  0xb4   : > { %v272_v28 = vpop.permute.xlu1 %271  ;;  %870 = vmatpush1.bf16.msra.mxu0 %v869_v24  ;;  %v260_v29 = vpop.permute.xlu0 %259  ;;  %v871_v30 = vpack.c.bf16 %v279_v27, %v267_v26 }
  0xb5   : > { %v278_v31 = vsel %vm277_vm2, %v272_v28, %v982_v22  ;;  %v266_v32 = vsel %vm265_vm3, %v260_v29, %v977_v15  ;;  %888 = vmatprep.subr.bf16.mxu1 %v887_v25 }
  0xb6   : > { %v873_v33 = vpack.c.bf16 %v278_v31, %v266_v32  ;;  %872 = vmatprep.subr.bf16.mxu0 %v871_v30  ;;  %890 = vmatpush3.bf16.msra.mxu1 %v887_v25 }
  0xb8   : > { %v1295_v34 = vpop.permute.xlu1 %287  ;;  %874 = vmatpush1.bf16.msra.mxu0 %v873_v33  ;;  %v286_v35 = vpop.permute.xlu0 %285 }
  0xb9   : > { %v1298_v40 = vsel %vm289_vm4, %v286_v35, %v1295_v34 }
  0xbc   : > { %v284_v36 = vpop.permute.xlu1 %283  ;;  %v986_v37 = vpop.permute.xlu0 %985 }
  0xbd   : > { %v988_v38 = vunpack.i.h.bf16 %v986_v37  ;;  %v987_v39 = vunpack.i.l.bf16 %v986_v37  ;;  %v1302_v46 = vsel %vm289_vm4, %v284_v36, %v286_v35 }
  0xbf   : > { %v891_v41 = vpack.c.bf16 %v988_v38, %v1295_v34  ;;  %v303_v42 = vsel %vm301_vm5, %v987_v39, %v988_v38 }
  0xc0   : > { %v991_v43 = vpop.permute.xlu1 %990  ;;  %v296_v44 = vpop.permute.xlu0 %295  ;;  %v875_v45 = vpack.c.bf16 %v303_v42, %v1298_v40 }
  0xc1   : > { %v302_v47 = vsel %vm301_vm5, %v296_v44, %v987_v39  ;;  %892 = vmatprep.subr.bf16.mxu1 %v891_v41  ;;  %v993_v49 = vunpack.i.h.bf16 %v991_v43  ;;  %v992_v50 = vunpack.i.l.bf16 %v991_v43 }
  0xc2   : > { %v877_v48 = vpack.c.bf16 %v302_v47, %v1302_v46  ;;  %876 = vmatprep.subr.bf16.mxu0 %v875_v45  ;;  %894 = vmatpush3.bf16.msra.mxu1 %v891_v41 }
  0xc3   : > { %v315_v56 = vsel %vm313_vm6, %v992_v50, %v993_v49 }
  0xc4   : > { %v308_v51 = vpop.permute.xlu1 %307  ;;  %v996_v52 = vpop.permute.xlu0 %995  ;;  %878 = vmatpush1.bf16.msra.mxu0 %v877_v48 }
  0xc5   : > { %v998_v53 = vunpack.i.h.bf16 %v996_v52  ;;  %v997_v54 = vunpack.i.l.bf16 %v996_v52  ;;  %v314_v61 = vsel %vm313_vm6, %v308_v51, %v992_v50 }
  0xc7   : > { %v895_v55 = vpack.c.bf16 %v998_v53, %v993_v49  ;;  %v327_v57 = vsel %vm325_vm7, %v997_v54, %v998_v53  ;;  %v558_v49 = vld [vmem:[%s1373_s3] sm:$0xf] }
  0xc8   : > { %v334_v58 = vpop.permute.xlu1 %333  ;;  %v320_v59 = vpop.permute.xlu0 %319  ;;  %v879_v60 = vpack.c.bf16 %v327_v57, %v315_v56 }
  0xc9   : > { %v326_v62 = vsel %vm325_vm7, %v320_v59, %v997_v54  ;;  %896 = vmatprep.subr.bf16.mxu1 %v895_v55 }
  0xca   : > { %v881_v63 = vpack.c.bf16 %v326_v62, %v314_v61  ;;  %880 = vmatprep.subr.bf16.mxu0 %v879_v60  ;;  %898 = vmatpush3.bf16.msra.mxu1 %v895_v55 }
  0xcc   : > { %v332_v0 = vpop.permute.xlu1 %331  ;;  %v336_v1 = vpop.permute.xlu0 %335  ;;  %882 = vmatpush1.bf16.msra.mxu0 %v881_v63 }
  0xcd   : > { %855 = vmatprep.subr.mxu1 %v336_v1  ;;  %v339_v3 = vsel %vm337_vm8, %v334_v58, %v336_v1  ;;  %v338_v6 = vsel %vm337_vm8, %v332_v0, %v334_v58 }
  0xce   : > { %380 = vmatprep.subr.mxu0 %v339_v3  ;;  %856 = vmatpush3.msra.mxu1 %v336_v1 }
  0xcf   : > { %858 = vmatmul.mubr.msk.f32.vlgmr.msra.gmra.mrb[0].mxu1 %vm357_vm0, %v344_v2 }
  0xd0   : > { %381 = vmatpush1.msra.mxu0 %v338_v6  ;;  %633 = vmatprep.mubr.f32.mxu1 %v1130_v5 }
  0xd1   : > { %810 = vmatmul.mubr.msk.f32.vlgmr.msra.gmra.mrb[0].mxu0 %vm357_vm0, %v1277_v4  ;;  %903 = vmatprep.subr.bf16.mxu0 %v1134_v7 }
  0xd2   : > { %434 = vmatprep.mubr.f32.mxu0 %v1130_v5 }
  0xd5   : > { %811 = vmatmul.mubr.msk.f32.gmra.mrb[2].mxu0 %vm357_vm0, %v344_v2 }
  0xd6   : > { %864 = vmatprep.mubr.msk.f32.mxu0 %vm1135_vm9, %v1130_v5 }
  0xdd   : > { %v355_v8 = vpop.permute.xlu1 %354  ;;  %v350_v9 = vpop.permute.xlu0 %349 }
  0xe1   : > { %v563_v57 = vpop.permute.xlu1 %562 }
 0x1a2   : > { %v859_v10 = vpop.f32.mrb[0].mxu1 }
 0x1a3   : > { %v513_v11 = vadd.f32 %v859_v10, %v355_v8  ;;  %v507_v12 = vpop.f32.mrb[1].mxu1 }
 0x1a4   : > { %v508_v13 = vadd.f32 %v507_v12, %v350_v9  ;;  %v430_v14 = vpop.f32.mrb[0].mxu0 }
 0x1a5   : > { %v819_v15 = vmul.f32 -1.442695, %v513_v11  ;;  %v431_v16 = vadd.f32 %v430_v14, %v350_v9  ;;  %v432_v17 = vpop.f32.mrb[1].mxu0 }
 0x1a6   : > { %v816_v4 = vmul.f32 -1.442695, %v508_v13  ;;  %v433_v18 = vadd.f32 %v432_v17, %v350_v9 }
 0x1a7   : > { %1001 = vpow2.f32 %v819_v15  ;;  %v814_v19 = vmul.f32 -1.442695, %v431_v16 }
 0x1a8   : > { %1003 = vpow2.f32 %v816_v4  ;;  %v815_v20 = vmul.f32 -1.442695, %v433_v18  ;;  %v436_v21 = vpop.f32.mrb[2].mxu0 }
 0x1a9   : > { %1005 = vpow2.f32 %v814_v19  ;;  %v437_v22 = vadd.f32 %v436_v21, %v355_v8  ;;  %v438_v5 = vpop.f32.mrb[3].mxu0 }
 0x1aa   : > { %1007 = vpow2.f32 %v815_v20  ;;  %v439_v23 = vadd.f32 %v438_v5, %v355_v8 }
 0x1ab   : > { %v817_v24 = vmul.f32 -1.442695, %v437_v22 }
 0x1ac   : > { %v818_v25 = vmul.f32 -1.442695, %v439_v23 }
 0x1ad   : > { %1009 = vpow2.f32 %v817_v24 }
 0x1ae   : > { %1011 = vpow2.f32 %v818_v25 }
 0x1b1   : > { %v1002_v26 = vpop.eup %1001 }
 0x1b2   : > { %v1004_v27 = vpop.eup %1003  ;;  %v539_v28 = vadd.f32 1.0, %v1002_v26 }
 0x1b3   : > { %v1006_v29 = vpop.eup %1005  ;;  %v536_v30 = vadd.f32 1.0, %v1004_v27 }
 0x1b4   : > { %v1008_v31 = vpop.eup %1007  ;;  %1013 = vrcp.f32 %v539_v28  ;;  %v534_v32 = vadd.f32 1.0, %v1006_v29 }
 0x1b5   : > { %1015 = vrcp.f32 %v536_v30  ;;  %v535_v33 = vadd.f32 1.0, %v1008_v31 }
 0x1b6   : > { %1017 = vrcp.f32 %v534_v32 }
 0x1b7   : > { %v1010_v35 = vpop.eup %1009  ;;  %1019 = vrcp.f32 %v535_v33 }
 0x1b8   : > { %v1012_v36 = vpop.eup %1011  ;;  %v537_v37 = vadd.f32 1.0, %v1010_v35 }
 0x1b9   : > { %v538_v38 = vadd.f32 1.0, %v1012_v36 }
 0x1ba   : > { %1021 = vrcp.f32 %v537_v37 }
 0x1bb   : > { %1023 = vrcp.f32 %v538_v38 }
 0x1be   : > { %v1014_v39 = vpop.eup %1013 }
 0x1bf   : > { %v1016_v41 = vpop.eup %1015  ;;  %v557_v42 = vmul.f32 %v1014_v39, %v513_v11 }
 0x1c0   : > { %v554_v43 = vmul.f32 %v1016_v41, %v508_v13  ;;  %v1018_v44 = vpop.eup %1017 }
 0x1c1   : > { %v1020_v47 = vpop.eup %1019  ;;  %v552_v51 = vmul.f32 %v1018_v44, %v431_v16 }
 0x1c2   : > { %v904_v45 = vpack.c.bf16 %v557_v42, %v554_v43  ;;  %v553_v53 = vmul.f32 %v1020_v47, %v433_v18 }
 0x1c4   : > { %v1022_v48 = vpop.eup %1021  ;;  %905 = vmatpush3.bf16.msra.mxu0 %v904_v45 }
 0x1c5   : > { %v1024_v50 = vpop.eup %1023  ;;  %v555_v52 = vmul.f32 %v1022_v48, %v437_v22 }
 0x1c6   : > { %v556_v54 = vmul.f32 %v1024_v50, %v439_v23 }
 0x1c7   : > { %v901_v55 = vpack.c.bf16 %v555_v52, %v552_v51  ;;  %865 = vmatmul.mubr.msk.f32.vlgmr.msra.gmra.mrb[4].mxu0 %vm565_vm10, %v558_v49 }
 0x1c8   : > { %v899_v56 = vpack.c.bf16 %v556_v54, %v553_v53 }
 0x1ca   : > { %900 = vmatprep.subr.bf16.mxu1 %v899_v56 }
 0x1cb   : > { %902 = vmatpush1.bf16.msra.mxu1 %v901_v55 }
 0x1ce   : > { %820 = vmatmul.mubr.msk.f32.vlgmr.msra.gmra.mrb[2].mxu1 %vm565_vm10, %v558_v49 }
 0x29a   : > { %v706_v58 = vpop.f32.mrb[4].mxu0 }
 0x29b   : > { %v707_v59 = vadd.f32 %v706_v58, %v563_v57  ;;  %v866_v60 = vpop.f32.mrb[5].mxu0 }
 0x29d   : > { %v712_v61 = vadd.f32 %v707_v59, %v1295_v34 }
 0x29f   : > { %719 = vst.msk [vmem:[%s240_s26 + $0x8] sm:$0xf] %vm718_vm11, %v712_v61 }
 0x2a1   : > { %v635_v62 = vpop.f32.mrb[2].mxu1 }
 0x2a2   : > { %v636_v63 = vadd.f32 %v635_v62, %v563_v57  ;;  %v637_v0 = vpop.f32.mrb[3].mxu1 }
 0x2a3   : > { %v638_v1 = vadd.f32 %v637_v0, %v563_v57 }
 0x2a4   : > { %v710_v2 = vadd.f32 %v636_v63, %v1302_v46 }
 0x2a5   : > { %v711_v3 = vadd.f32 %v638_v1, %v1298_v40 }
 0x2a7   : > { %v715_v6 = vcombine.low %v710_v2, %v711_v3 }
 0x2a9   : > { %717 = vst [vmem:[%s240_s26] sm:$0xff] %v715_v6 }
 0x2aa   : > { %1068 = shalt.err (!%p1065_p4)
}
 0x2ab   : > { %s1069_s13 = scalar_lea.hbm %s1326_s10, 192  ;;  %s1073_s15 = scalar_lea.hbm %s1375_s5, 384 }
 0x2ac   : > { %p1070_p7 = scmp.ne.s32.totalorder %s1326_s10, %s1069_s13  ;;  %p1074_p0 = scmp.lt.u32.totalorder %s1326_s10, %s1375_s5 }
 0x2ad   : > { %p1075_p1 = scmp.lt.u32.totalorder %s1073_s15, %s1069_s13  ;;  %p1077_p6 = scmp.lt.u32.totalorder %s1069_s13, %s1326_s10 }
 0x2ae   : > { %p1071_p8 = pnand %p1070_p7, %p1383_p11 }
 0x2af   : > { %p1076_p3 = por %p1075_p1, %p1074_p0 }
 0x2b0   : > { %p1072_p9 = pneg %p1071_p8 }
 0x2b1   : > { %p1078_p12 = por %p1077_p6, %p1076_p3 }
 0x2b3   : > { %p1079_p13 = pnand %p1078_p12, %p1072_p9 }
 0x2b5   : > { %1082 = shalt.err (!%p1079_p13)
}
 0x2b6   : > { %913 = dma.vmem_to_hbm [thread:$0]  (%p1383_p11), %s1328_s6, 192, %s1326_s10, %s721_s16  }
 0x2b7 PF: > { %s747_s26 = sand.u32 1, %s1109_s18   ;;  %p1384_p5 = scmp.ne.s32.totalorder %s1379_s30, 0 }
 0x2b8   : > { %p1385_p10 = scmp.ge.s32.totalorder %s1121_s21, 2  ;;  %s748_s7 = scalar_lea.sflag [#allocation4], %s747_s26 }
 0x2ba   : > { %p920_p2 = pnand %p1385_p10, %p1384_p5 }
 0x2bc   : > { %1104 = dma.done.wait (!%p920_p2), %s748_s7, 192  }
 0x2bd   : > { %1106 = vsyncadd (!%p920_p2), %s748_s7, 4294967104  ;;  %p18_p4 = scmp.ge.s32.totalorder %s1192_s24, 4   ;;  %s1386_s18 = smov %s1113_s19 }
 0x2be   : > { %s1387_s19 = smov %s1117_s20  ;;  %s1388_s20 = smov %s1204_s27 }
 0x2bf   : > { %s1389_s21 = smov %s1192_s24  ;;  %20 = sbr.rel (!%p18_p4) target bundleno = 5 (0x5), region = 85 }
 0x2c6   :  { %753 = vsyncpa [#allocation3], 1 }
 0x2c7   :  { %755 = vsyncpa [#allocation3 + $0x1], 1 }
 0x2c8   :  { %756 = vsyncpa [#allocation4], 1 }
 0x2c9   :  { %758 = vsyncpa [#allocation4 + $0x1], 1 }

</bundles_post_ra>
